<compile_context>
chip_gen: v5e
topology: v5e:2x2
jax: 0.10.0
libtpu: 0.0.40
codegen_flags: <defaults>
</compile_context>

<pallas_src>
import jax
import jax.numpy as jnp
from jax.experimental import pallas as pl
from jax.experimental.pallas import tpu as pltpu


# Lane-dense width (multiple of 128), accumulator sublane rows, max tile rows.
_LW = 512
_ACC_R = 8
_MAX_TILE_R = 512
_NUM_SPLITS = 2  # leading "parallel" grid axis (both TCs on v7x; free on 1-TC chips)


def _round_up(x, m):
    return ((x + m - 1) // m) * m


def _dice_loss_kernel(x_ref, t_ref, prod_ref, sum_ref):
    """Accumulates per-core partial sums of sigmoid(x)*t and sigmoid(x)+t.

    x_ref, t_ref       : VMEM tiles (tile_r, LW)
    prod_ref, sum_ref  : VMEM (ACC_R, LW) f32 accumulators (kernel outputs,
                         resident across the inner reduction axis)
    """
    i = pl.program_id(1)

    @pl.when(i == 0)
    def _():
        prod_ref[...] = jnp.zeros_like(prod_ref)
        sum_ref[...] = jnp.zeros_like(sum_ref)

    x = x_ref[...].astype(jnp.float32)
    t = t_ref[...].astype(jnp.float32)
    s = jax.nn.sigmoid(x)

    acc_r, lw = prod_ref.shape
    # Fold (tile_r, LW) -> (ACC_R, LW) with pure VPU adds (no cross-lane XLU
    # reductions per step); the single cross-lane reduce happens in the
    # wrapper on the tiny partial slabs.
    prod_ref[...] += jnp.sum((s * t).reshape(-1, acc_r, lw), axis=0)
    sum_ref[...] += jnp.sum((s + t).reshape(-1, acc_r, lw), axis=0)


def dice_loss(inputs, targets, smooth=1.0, dimention=2):
    """Pallas implementation of DiceLoss.forward.

    inputs : (B, C, H, W) logits (NCHW); f32 or bf16.
    targets: same number of elements as inputs, in the flattened (B*C*H, W)
             layout produced by torch's flatten(0, 2) (any order-preserving
             layout gives the same loss since all reductions are global).
    """
    del dimention  # unused by the reference forward as well
    assert targets.size == inputs.size, "targets must match flattened inputs"

    total = inputs.size
    rows = -(-total // _LW)  # cdiv
    tile_r = min(_MAX_TILE_R, _round_up(-(-rows // _NUM_SPLITS), _ACC_R))
    rows_pad = _round_up(rows, _NUM_SPLITS * tile_r)
    inner = rows_pad // (_NUM_SPLITS * tile_r)
    pad_elems = rows_pad * _LW - total

    # Pad logits with a huge negative (sigmoid -> exactly 0) and targets with
    # 0 so padded elements contribute nothing to any of the sums.
    x_flat = jnp.pad(inputs.reshape(-1), (0, pad_elems), constant_values=-1e30)
    t_flat = jnp.pad(targets.reshape(-1), (0, pad_elems), constant_values=0)
    x2d = x_flat.reshape(rows_pad, _LW)
    t2d = t_flat.reshape(rows_pad, _LW)

    out_shape = (
        jax.ShapeDtypeStruct((_NUM_SPLITS * _ACC_R, _LW), jnp.float32),
        jax.ShapeDtypeStruct((_NUM_SPLITS * _ACC_R, _LW), jnp.float32),
    )

    prod_part, sum_part = pl.pallas_call(
        _dice_loss_kernel,
        out_shape=out_shape,
        grid_spec=pltpu.PrefetchScalarGridSpec(
            num_scalar_prefetch=0,
            grid=(_NUM_SPLITS, inner),
            in_specs=[
                pl.BlockSpec((tile_r, _LW), lambda c, i: (c * inner + i, 0)),
                pl.BlockSpec((tile_r, _LW), lambda c, i: (c * inner + i, 0)),
            ],
            out_specs=[
                pl.BlockSpec((_ACC_R, _LW), lambda c, i: (c, 0)),
                pl.BlockSpec((_ACC_R, _LW), lambda c, i: (c, 0)),
            ],
        ),
        compiler_params=pltpu.CompilerParams(
            dimension_semantics=("parallel", "arbitrary"),
            vmem_limit_bytes=32 * 1024 * 1024,
        ),
    )(x2d, t2d)

    # Tiny final reduction + dice arithmetic on the per-core partials.
    smooth = jnp.float32(smooth)
    intersection = jnp.sum(prod_part)
    denom = jnp.sum(sum_part) + smooth
    dice = (2.0 * intersection + smooth) / denom
    return 1.0 - dice


def _dice_loss_ref(inputs, targets, smooth=1.0):
    """Pure-JAX reference mirroring the PyTorch module."""
    s = jax.nn.sigmoid(inputs.astype(jnp.float32))
    s = s.reshape(-1, inputs.shape[-1])
    t = targets.astype(jnp.float32)
    intersection = jnp.sum(s * t)
    dice = (2.0 * intersection + smooth) / (jnp.sum(s) + jnp.sum(t) + smooth)
    return 1.0 - dice


if __name__ == "__main__":
    key = jax.random.PRNGKey(0)
    k1, k2 = jax.random.split(key)

    B, C, H, W = 2, 4, 16, 16
    inputs = jax.random.normal(k1, (B, C, H, W), dtype=jnp.float32)
    # Binary targets in the flattened (B*C*H, W) layout.
    targets = (jax.random.uniform(k2, (B * C * H, W)) > 0.5).astype(jnp.float32)

    loss = dice_loss(inputs, targets, smooth=1.0)
    jax.block_until_ready(loss)

    ref = _dice_loss_ref(inputs, targets, smooth=1.0)
    assert jnp.allclose(loss, ref, rtol=1e-5, atol=1e-5), (loss, ref)

    print("KERNEL_OK")
</pallas_src>

<mosaic_0001>
module attributes {stable_mosaic.version = 11 : i64} {
  func.func @_dice_loss_kernel(%arg0: i32, %arg1: i32, %arg2: memref<8x512xf32, #tpu.memory_space<vmem>>, %arg3: memref<8x512xf32, #tpu.memory_space<vmem>>, %arg4: memref<8x512xf32, #tpu.memory_space<vmem>>, %arg5: memref<8x512xf32, #tpu.memory_space<vmem>>) attributes {dimension_semantics = [#tpu.dimension_semantics<parallel>, #tpu.dimension_semantics<arbitrary>], iteration_bounds = array<i64: 2, 1>, scalar_prefetch = 0 : i64, scratch_operands = 0 : i64, tpu.core_type = #tpu.core_type<tc>, window_params = [{transform_indices = @transform_0, window_bounds = array<i64: 8, 512>}, {transform_indices = @transform_1, window_bounds = array<i64: 8, 512>}, {transform_indices = @transform_2, window_bounds = array<i64: 8, 512>}, {transform_indices = @transform_3, window_bounds = array<i64: 8, 512>}]} {
    %c0_i32 = arith.constant 0 : i32
    %0 = arith.cmpi eq, %arg1, %c0_i32 : i32
    %1 = arith.extui %0 : i1 to i32
    %c0_i32_0 = arith.constant 0 : i32
    %2 = arith.cmpi ne, %1, %c0_i32_0 : i32
    scf.if %2 {
      %cst_14 = arith.constant 0.000000e+00 : f32
      %22 = vector.broadcast %cst_14 : f32 to vector<8x512xf32>
      %c0_15 = arith.constant 0 : index
      %c0_16 = arith.constant 0 : index
      %23 = vector.load %arg4[%c0_15, %c0_16] : memref<8x512xf32, #tpu.memory_space<vmem>>, vector<8x512xf32>
      tpu.vector_store %arg4[%c0_15, %c0_16], %22 {strides = array<i32>} : memref<8x512xf32, #tpu.memory_space<vmem>>, vector<8x512xf32>,
      %cst_17 = arith.constant 0.000000e+00 : f32
      %24 = vector.broadcast %cst_17 : f32 to vector<8x512xf32>
      %c0_18 = arith.constant 0 : index
      %c0_19 = arith.constant 0 : index
      %25 = vector.load %arg5[%c0_18, %c0_19] : memref<8x512xf32, #tpu.memory_space<vmem>>, vector<8x512xf32>
      tpu.vector_store %arg5[%c0_18, %c0_19], %24 {strides = array<i32>} : memref<8x512xf32, #tpu.memory_space<vmem>>, vector<8x512xf32>,
    } else {
    }
    %c0 = arith.constant 0 : index
    %c0_1 = arith.constant 0 : index
    %3 = vector.load %arg2[%c0, %c0_1] : memref<8x512xf32, #tpu.memory_space<vmem>>, vector<8x512xf32>
    %c0_2 = arith.constant 0 : index
    %c0_3 = arith.constant 0 : index
    %4 = vector.load %arg3[%c0_2, %c0_3] : memref<8x512xf32, #tpu.memory_space<vmem>>, vector<8x512xf32>
    %5 = arith.negf %3 : vector<8x512xf32>
    %6 = math.exp %5 : vector<8x512xf32>
    %cst = arith.constant 1.000000e+00 : f32
    %7 = vector.broadcast %cst : f32 to vector<8x512xf32>
    %8 = arith.addf %7, %6 : vector<8x512xf32>
    %9 = arith.divf %7, %8 : vector<8x512xf32>
    %c0_4 = arith.constant 0 : index
    %c0_5 = arith.constant 0 : index
    %10 = vector.load %arg4[%c0_4, %c0_5] : memref<8x512xf32, #tpu.memory_space<vmem>>, vector<8x512xf32>
    %11 = arith.mulf %9, %4 : vector<8x512xf32>
    %12 = vector.shape_cast %11 : vector<8x512xf32> to vector<1x8x512xf32>
    %cst_6 = arith.constant dense<0.000000e+00> : vector<8x512xf32>
    %13 = vector.multi_reduction <add>, %12, %cst_6 [0] : vector<1x8x512xf32> to vector<8x512xf32>
    %14 = arith.addf %10, %13 : vector<8x512xf32>
    %c0_7 = arith.constant 0 : index
    %c0_8 = arith.constant 0 : index
    %15 = vector.load %arg4[%c0_7, %c0_8] : memref<8x512xf32, #tpu.memory_space<vmem>>, vector<8x512xf32>
    tpu.vector_store %arg4[%c0_7, %c0_8], %14 {strides = array<i32>} : memref<8x512xf32, #tpu.memory_space<vmem>>, vector<8x512xf32>,
    %c0_9 = arith.constant 0 : index
    %c0_10 = arith.constant 0 : index
    %16 = vector.load %arg5[%c0_9, %c0_10] : memref<8x512xf32, #tpu.memory_space<vmem>>, vector<8x512xf32>
    %17 = arith.addf %9, %4 : vector<8x512xf32>
    %18 = vector.shape_cast %17 : vector<8x512xf32> to vector<1x8x512xf32>
    %cst_11 = arith.constant dense<0.000000e+00> : vector<8x512xf32>
    %19 = vector.multi_reduction <add>, %18, %cst_11 [0] : vector<1x8x512xf32> to vector<8x512xf32>
    %20 = arith.addf %16, %19 : vector<8x512xf32>
    %c0_12 = arith.constant 0 : index
    %c0_13 = arith.constant 0 : index
    %21 = vector.load %arg5[%c0_12, %c0_13] : memref<8x512xf32, #tpu.memory_space<vmem>>, vector<8x512xf32>
    tpu.vector_store %arg5[%c0_12, %c0_13], %20 {strides = array<i32>} : memref<8x512xf32, #tpu.memory_space<vmem>>, vector<8x512xf32>,
    return
  }
  func.func @transform_0(%arg0: i32, %arg1: i32) -> (i32, i32) {
    %c1_i32 = arith.constant 1 : i32
    %0 = arith.muli %arg0, %c1_i32 : i32
    %1 = arith.addi %0, %arg1 : i32
    %c0_i32 = arith.constant 0 : i32
    %c0_i32_0 = arith.constant 0 : i32
    return %1, %c0_i32 : i32, i32
  }
  func.func @transform_1(%arg0: i32, %arg1: i32) -> (i32, i32) {
    %c1_i32 = arith.constant 1 : i32
    %0 = arith.muli %arg0, %c1_i32 : i32
    %1 = arith.addi %0, %arg1 : i32
    %c0_i32 = arith.constant 0 : i32
    %c0_i32_0 = arith.constant 0 : i32
    return %1, %c0_i32 : i32, i32
  }
  func.func @transform_2(%arg0: i32, %arg1: i32) -> (i32, i32) {
    %c0_i32 = arith.constant 0 : i32
    %c0_i32_0 = arith.constant 0 : i32
    return %arg0, %c0_i32 : i32, i32
  }
  func.func @transform_3(%arg0: i32, %arg1: i32) -> (i32, i32) {
    %c0_i32 = arith.constant 0 : i32
    %c0_i32_0 = arith.constant 0 : i32
    return %arg0, %c0_i32 : i32, i32
  }
}

</mosaic_0001>

<bundles_post_ra>
// kernel: tpu_custom_call.1
= control target key start
LH: loop header
LB: loop body
LE: loop exit
PB: predicated region body
PF: predicated region fallthrough
CT: control target
= control target key end

     0   :  { %9 = vsyncpa [#allocation3], 0  ;;  %s1098_s0 = inlined_call_operand.hbm [shape: f32[16,512], index: 0, kind: input, shape index: {}]   ;;  %s1099_s1 = inlined_call_operand.hbm [shape: f32[16,512], index: 1, kind: input, shape index: {}]   ;;  %s1100_s2 = inlined_call_operand.hbm [shape: f32[16,512], index: 2, kind: output, shape index: {0}]   ;;  %s1101_s3 = inlined_call_operand.hbm [shape: f32[16,512], index: 3, kind: output, shape index: {1}]  }
   0x1   :  { %11 = vsyncpa [#allocation3 + $0x1], 0 }
   0x2   :  { %12 = vsyncpa [#allocation6], 0 }
   0x3   :  { %14 = vsyncpa [#allocation6 + $0x1], 0 }
   0x4   :  { %15 = vsyncpa [#allocation4], 0 }
   0x5   :  { %17 = vsyncpa [#allocation4 + $0x1], 0 }
   0x6   :  { %18 = vsyncpa [#allocation9], 0 }
   0x7   :  { %20 = vsyncpa [#allocation9 + $0x1], 0  ;;  %s889_s12 = smov 0   ;;  %s891_s13 = smov 0  }
   0x8   :  { %s893_s14 = smov 0   ;;  %s895_s15 = smov 0  }
   0x9   :  { %s897_s16 = smov 0   ;;  %s899_s17 = smov 0  }
   0xa LB: > { %s569_s18 = sadd.s32 4294967295, %s867_s17   ;;  %s570_s19 = sadd.s32 4294967294, %s867_s17   ;;  %s867_s17 = sphi %s899_s17, %s26_s17   ;;  %s863_s16 = sphi %s897_s16, %s1124_s16   ;;  %s859_s15 = sphi %s895_s15, %s1123_s15   ;;  %s855_s14 = sphi %s893_s14, %s1122_s14   ;;  %s851_s13 = sphi %s891_s13, %s1121_s13   ;;  %s847_s12 = sphi %s889_s12, %s1120_s12  }
   0xb   : > { %s38_s20 = sadd.s32 1, %s863_s16  ;;  %s47_s21 = sadd.s32 1, %s855_s14 }
   0xc   : > { %p40_p0 = scmp.ge.s32.totalorder %s38_s20, 2  ;;  %p54_p1 = scmp.ne.s32.totalorder %s855_s14, %s851_s13 }
   0xd   : > { %p55_p2 = scmp.eq.s32.totalorder %s867_s17, 0  ;;  %p60_p3 = scmp.ne.s32.totalorder %s851_s13, %s847_s12 }
   0xe   : > { %s1126_s20 = smov (%p40_p0, %s38_s20), 0  ;;  %p61_p5 = scmp.eq.s32.totalorder %s569_s18, 0 }
   0xf   : > { %p930_p4 = por %p55_p2, %p54_p1  ;;  %s44_s23 = ssub.s32 %s863_s16, %s1126_s20 }
  0x10   : > { %p112_p6 = scmp.eq.s32.totalorder %s569_s18, 1  ;;  %p45_p7 = scmp.eq.s32.totalorder %s44_s23, 0 }
  0x11   : > { %p936_p8 = por %p61_p5, %p60_p3  ;;  %p118_p10 = scmp.eq.s32.totalorder %s570_s19, 1 }
  0x12   : > { %p940_p9 = por %p112_p6, %p54_p1  ;;  %p572_p12 = scmp.ge.s32.totalorder %s867_s17, 2 }
  0x13   : > { %s945_s26 = scalar_select %p45_p7, %s855_s14, %s47_s21  }
  0x14   : > { %p947_p11 = por %p118_p10, %p60_p3  ;;  %p622_p13 = scmp.lt.s32.totalorder %s867_s17, 2 }
  0x15   : > { %s164_s28 = sand.u32 1, %s855_s14   ;;  %s596_s30 = sshll.u32 %s863_s16, 5 }
  0x16   : > { %s573_s29 = sshll.u32 %s164_s28, 5  ;;  %s174_s6 = scalar_lea.hbm %s1098_s0, %s596_s30 }
  0x17   : > { %s168_s7 = scalar_lea.vmem [#allocation2], %s573_s29  ;;  %s176_s9 = sshll.u32 %s174_s6, 4  ;;  %s177_s9 = int_to_ptr.hbm [resolvable:$true] %s176_s9 }
  0x18   : > { %s178_s8 = sshll.u32 %s168_s7, 4  ;;  %p609_p0 = pnand %p622_p13, %p930_p4  ;;  %s179_s8 = int_to_ptr.vmem [resolvable:$true] %s178_s8 }
  0x19   : > { %p579_p1 = scmp.ge.s32.totalorder %s867_s17, 1  ;;  %p204_p2 = scmp.lt.s32.totalorder %s867_s17, 3 }
  0x1a   : > { %s165_s10 = scalar_lea.sflag [#allocation3], %s164_s28  ;;  %s195_s19 = scalar_lea.hbm %s1099_s1, %s596_s30 }
  0x1b   : > { %611 = dma.hbm_to_vmem [thread:$0]  (!%p609_p0), %s177_s9, 512, %s179_s8, %s165_s10  }
  0x1c   : > { %p205_p3 = pnand %p579_p1, %p204_p2  ;;  %s189_s21 = scalar_lea.vmem [#allocation5], %s573_s29 }
  0x1d   : > { %s199_s23 = sshll.u32 %s189_s21, 4  ;;  %s197_s4 = sshll.u32 %s195_s19, 4  ;;  %s200_s23 = int_to_ptr.vmem [resolvable:$true] %s199_s23  ;;  %s198_s4 = int_to_ptr.hbm [resolvable:$true] %s197_s4 }
  0x1e   : > { %s186_s5 = scalar_lea.sflag [#allocation6], %s164_s28  ;;  %208 = sbr.rel (%p205_p3) target bundleno = 90 (0x5a), region = 28 }
  0x1f   : > { %614 = dma.hbm_to_vmem [thread:$0]  (!%p609_p0), %s198_s4, 512, %s200_s23, %s186_s5  }
  0x20   : > { %s966_s22 = sand.u32 (!%p205_p3), 1, %s851_s13  }
  0x21   : > { %s969_s6 = sshll.u32 (!%p205_p3), %s966_s22, 5  ;;  %s211_s7 = scalar_lea.sflag (!%p205_p3), [#allocation3], %s966_s22 }
  0x22   : > { %s214_s8 = scalar_lea.vmem (!%p205_p3), [#allocation2], %s969_s6 }
  0x23   : > { %830 = dma.done.wait (%p936_p8), %s211_s7, 512  }
  0x24   : > { %832 = vsyncadd (%p936_p8), %s211_s7, 4294966784  ;;  %s221_s28 = scalar_lea.sflag [#allocation6], %s966_s22  ;;  %s979_s29 = scalar_lea.vmem [#allocation5], %s969_s6 }
  0x25   : > { %834 = dma.done.wait (%p936_p8), %s221_s28, 512  }
  0x26   : > { %836 = vsyncadd (%p936_p8), %s221_s28, 4294966784  ;;  %v272_v0 = vld [vmem:[%s214_s8] sm:$0xff]  ;;  %v273_v1 = vld [vmem:[%s214_s8 + $0x8] sm:$0xff]  ;;  %s598_s24 = sshll.u32 %s859_s15, 5  ;;  %s250_s19 = scalar_lea.vmem [#allocation7], %s969_s6 }
  0x27   : > { %v584_v2 = vmul.f32 -1.442695, %v272_v0  ;;  %v585_v3 = vmul.f32 -1.442695, %v273_v1  ;;  %v274_v4 = vld [vmem:[%s214_s8 + $0x10] sm:$0xff]  ;;  %v275_v6 = vld [vmem:[%s214_s8 + $0x18] sm:$0xff]  ;;  %s413_s9 = scalar_lea.hbm %s1100_s2, %s598_s24  ;;  %s428_s18 = scalar_lea.hbm %s1101_s3, %s598_s24 }
  0x28   : > { %v586_v5 = vmul.f32 -1.442695, %v274_v4  ;;  %v587_v7 = vmul.f32 -1.442695, %v275_v6  ;;  %v276_v43 = vld [vmem:[%s979_s29] sm:$0xff]  ;;  %v277_v48 = vld [vmem:[%s979_s29 + $0x8] sm:$0xff] }
  0x29   : > { %673 = vpow2.f32 %v584_v2  ;;  %v278_v63 = vld [vmem:[%s979_s29 + $0x10] sm:$0xff]  ;;  %s415_s21 = sshll.u32 %s250_s19, 4  ;;  %s417_s23 = sshll.u32 %s413_s9, 4  ;;  %s416_s21 = int_to_ptr.vmem [resolvable:$true] %s415_s21  ;;  %s418_s23 = int_to_ptr.hbm [resolvable:$true] %s417_s23 }
  0x2a   : > { %675 = vpow2.f32 %v585_v3  ;;  %v279_v3 = vld [vmem:[%s979_s29 + $0x18] sm:$0xff]  ;;  %s257_s4 = scalar_lea.vmem [#allocation8], %s969_s6  ;;  %s432_s7 = sshll.u32 %s428_s18, 4  ;;  %s1048_s7 = int_to_ptr.hbm [resolvable:$true] %s432_s7 }
  0x2b   : > { %677 = vpow2.f32 %v586_v5  ;;  %s430_s5 = sshll.u32 %s257_s4, 4  ;;  %s397_s8 = scalar_lea.sflag [#allocation4], %s966_s22  ;;  %s1046_s5 = int_to_ptr.vmem [resolvable:$true] %s430_s5 }
  0x2c   : > { %679 = vpow2.f32 %v587_v7  ;;  %s763_s28 = sshra.s32 %s418_s23, 4  ;;  %s769_s15 = scalar_lea.hbm %s1100_s2, 64  ;;  %s764_s28 = int_to_ptr.hbm [resolvable:$true] %s763_s28 }
  0x2d   : > { %s765_s29 = scalar_lea.hbm %s764_s28, 32  ;;  %p770_p7 = scmp.lt.s32.totalorder %s764_s28, %s1100_s2 }
  0x2e   : > { %p766_p4 = scmp.ne.s32.totalorder %s764_s28, %s765_s29  ;;  %p771_p8 = scmp.lt.s32.totalorder %s769_s15, %s765_s29 }
  0x2f   : > { %v674_v8 = vpop.eup %673 }
  0x30   : > { %v676_v9 = vpop.eup %675  ;;  %v292_v10 = vadd.f32 1.0, %v674_v8  ;;  %p767_p5 = pnand %p766_p4, %p940_p9  ;;  %p772_p10 = por %p771_p8, %p770_p7 }
  0x31   : > { %v678_v11 = vpop.eup %677  ;;  %v293_v12 = vadd.f32 1.0, %v676_v9 }
  0x32   : > { %v680_v13 = vpop.eup %679  ;;  %681 = vrcp.f32 %v292_v10  ;;  %v294_v14 = vadd.f32 1.0, %v678_v11  ;;  %v305_v16 = vand.u32 2147483647, %v292_v10  ;;  %v307_v17 = vand.u32 2147483648, %v292_v10  ;;  %p768_p6 = pneg %p767_p5 }
  0x33   : > { %683 = vrcp.f32 %v293_v12  ;;  %v295_v15 = vadd.f32 1.0, %v680_v13  ;;  %v320_v19 = vand.u32 2147483647, %v293_v12  ;;  %v322_v20 = vand.u32 2147483648, %v293_v12 }
  0x34   : > { %685 = vrcp.f32 %v294_v14  ;;  %vm301_vm0 = vweird.f32 %v292_v10  ;;  %vm316_vm1 = vweird.f32 %v293_v12  ;;  %vm985_vm3 = vcmp.eq.f32.partialorder %v305_v16, 8.507059e+37  ;;  %p773_p13 = pnand %p772_p10, %p768_p6 }
  0x35   : > { %687 = vrcp.f32 %v295_v15  ;;  %v308_v26 = vor.u32 1.1754944e-38, %v307_v17  ;;  %vm989_vm5 = vcmp.eq.f32.partialorder %v320_v19, 8.507059e+37  ;;  %v323_v30 = vor.u32 1.1754944e-38, %v322_v20 }
  0x36   : > { %v335_v34 = vand.u32 2147483647, %v294_v14  ;;  %v337_v35 = vand.u32 2147483648, %v294_v14  ;;  %vm331_vm7 = vweird.f32 %v294_v14  ;;  %v352_v39 = vand.u32 2147483648, %v295_v15 }
  0x37   : > { %vm346_vm10 = vweird.f32 %v295_v15  ;;  %v350_v46 = vand.u32 2147483647, %v295_v15 }
  0x38   : > { %v682_v18 = vpop.eup %681  ;;  %vm1007_vm12 = vcmp.eq.f32.partialorder %v335_v34, 8.507059e+37  ;;  %v338_v51 = vor.u32 1.1754944e-38, %v337_v35  ;;  %v353_v56 = vor.u32 1.1754944e-38, %v352_v39 }
  0x39   : > { %v684_v21 = vpop.eup %683  ;;  %v297_v22 = vmul.f32 %v682_v18, %v292_v10  ;;  %vm302_vm2 = vweird.f32 %v682_v18  ;;  %vm351_vm15 = vcmp.eq.f32.partialorder %v350_v46, 8.507059e+37 }
  0x3a   : > { %v312_v23 = vmul.f32 %v684_v21, %v293_v12  ;;  %v686_v27 = vpop.eup %685  ;;  %vm317_vm4 = vweird.f32 %v684_v21  ;;  %vm994_vm6 = vmor %vm301_vm0, %vm302_vm2 }
  0x3b   : > { %v298_v24 = vsub.f32 1.0, %v297_v22  ;;  %v688_v31 = vpop.eup %687  ;;  %v327_v33 = vmul.f32 %v686_v27, %v294_v14  ;;  %vm999_vm8 = vmor %vm316_vm1, %vm317_vm4  ;;  %vm332_vm9 = vweird.f32 %v686_v27 }
  0x3c   : > { %v313_v28 = vsub.f32 1.0, %v312_v23  ;;  %v342_v38 = vmul.f32 %v688_v31, %v295_v15  ;;  %vm347_vm11 = vweird.f32 %v688_v31  ;;  %vm1018_vm13 = vmor %vm331_vm7, %vm332_vm9 }
  0x3d   : > { %v299_v32 = vmul.f32 %v682_v18, %v298_v24  ;;  %v328_v42 = vsub.f32 1.0, %v327_v33  ;;  %vm1026_vm14 = vmor %vm346_vm10, %vm347_vm11 }
  0x3e   : > { %v314_v37 = vmul.f32 %v684_v21, %v313_v28  ;;  %v343_v45 = vsub.f32 1.0, %v342_v38 }
  0x3f   : > { %v300_v40 = vadd.f32 %v682_v18, %v299_v32  ;;  %v329_v49 = vmul.f32 %v686_v27, %v328_v42 }
  0x40   : > { %v315_v44 = vadd.f32 %v684_v21, %v314_v37  ;;  %v344_v55 = vmul.f32 %v688_v31, %v343_v45 }
  0x41   : > { %v304_v47 = vsel %vm994_vm6, %v682_v18, %v300_v40  ;;  %v330_v59 = vadd.f32 %v686_v27, %v329_v49 }
  0x42   : > { %v309_v52 = vsel %vm985_vm3, %v308_v26, %v304_v47  ;;  %v319_v53 = vsel %vm999_vm8, %v684_v21, %v315_v44  ;;  %v345_v0 = vadd.f32 %v688_v31, %v344_v55 }
  0x43   : > { %v360_v57 = vmul.f32 %v309_v52, %v276_v43  ;;  %v324_v58 = vsel %vm989_vm5, %v323_v30, %v319_v53  ;;  %v380_v61 = vadd.f32 %v309_v52, %v276_v43  ;;  %v334_v2 = vsel %vm1018_vm13, %v686_v27, %v330_v59 }
  0x44   : > { %v361_v62 = vmul.f32 %v324_v58, %v277_v48  ;;  %v381_v1 = vadd.f32 %v324_v58, %v277_v48  ;;  %v339_v4 = vsel %vm1007_vm12, %v338_v51, %v334_v2  ;;  %v349_v5 = vsel %vm1026_vm14, %v688_v31, %v345_v0 }
  0x45   : > { %372 = vst [vmem:[%s250_s19] sm:$0xff] %v360_v57  ;;  %v362_v6 = vmul.f32 %v339_v4, %v278_v63  ;;  %v354_v7 = vsel %vm351_vm15, %v353_v56, %v349_v5  ;;  %v382_v8 = vadd.f32 %v339_v4, %v278_v63 }
  0x46   : > { %373 = vst [vmem:[%s250_s19 + $0x8] sm:$0xff] %v361_v62  ;;  %v363_v9 = vmul.f32 %v354_v7, %v279_v3  ;;  %v383_v10 = vadd.f32 %v354_v7, %v279_v3 }
  0x47   : > { %392 = vst [vmem:[%s257_s4] sm:$0xff] %v380_v61 }
  0x48   : > { %393 = vst [vmem:[%s257_s4 + $0x8] sm:$0xff] %v381_v1 }
  0x49   : > { %374 = vst [vmem:[%s250_s19 + $0x10] sm:$0xff] %v362_v6 }
  0x4a   : > { %375 = vst [vmem:[%s250_s19 + $0x18] sm:$0xff] %v363_v9 }
  0x4b   : > { %394 = vst [vmem:[%s257_s4 + $0x10] sm:$0xff] %v382_v8 }
  0x4c   : > { %776 = shalt.err (!%p773_p13)
}
  0x4d   : > { %604 = dma.vmem_to_hbm [thread:$0]  (%p940_p9), %s416_s21, 512, %s418_s23, %s397_s8   ;;  %395 = vst [vmem:[%s257_s4 + $0x18] sm:$0xff] %v383_v10 }
  0x4e   : > { %s402_s10 = scalar_lea.sflag [#allocation9], %s966_s22  ;;  %s791_s11 = sshra.s32 %s1048_s7, 4  ;;  %s792_s11 = int_to_ptr.hbm [resolvable:$true] %s791_s11 }
  0x4f   : > { %s793_s18 = scalar_lea.hbm %s792_s11, 32  ;;  %s797_s29 = scalar_lea.hbm %s1101_s3, 64 }
  0x50   : > { %p794_p0 = scmp.ne.s32.totalorder %s792_s11, %s793_s18  ;;  %p798_p3 = scmp.lt.s32.totalorder %s792_s11, %s1101_s3 }
  0x51   : > { %p799_p4 = scmp.lt.s32.totalorder %s797_s29, %s793_s18 }
  0x52   : > { %p795_p1 = pnand %p794_p0, %p940_p9 }
  0x53   : > { %p800_p5 = por %p799_p4, %p798_p3 }
  0x54   : > { %p796_p2 = pneg %p795_p1 }
  0x56   : > { %p801_p6 = pnand %p800_p5, %p796_p2 }
  0x58   : > { %804 = shalt.err (!%p801_p6)
}
  0x59   : > { %605 = dma.vmem_to_hbm [thread:$0]  (%p940_p9), %s1046_s5, 512, %s1048_s7, %s402_s10  }
  0x5a PF: > { %s444_s22 = sand.u32 1, %s847_s12   ;;  %p616_p7 = pnand %p572_p12, %p947_p11 }
  0x5b   : > { %s445_s21 = scalar_lea.sflag [#allocation4], %s444_s22 }
  0x5c   : > { %p617_p8 = pneg %p616_p7 }
  0x5e   : > { %838 = dma.done.wait (%p617_p8), %s445_s21, 512  }
  0x5f   : > { %840 = vsyncadd (%p617_p8), %s445_s21, 4294966784  ;;  %s455_s23 = scalar_lea.sflag [#allocation9], %s444_s22 }
  0x60   : > { %842 = dma.done.wait (%p617_p8), %s455_s23, 512  }
  0x61   : > { %844 = vsyncadd (%p617_p8), %s455_s23, 4294966784  ;;  %s26_s17 = sadd.s32 1, %s867_s17   ;;  %s1120_s12 = smov %s851_s13 }
  0x62   : > { %p23_p10 = scmp.ge.s32.totalorder %s26_s17, 4   ;;  %s1121_s13 = smov %s855_s14 }
  0x63   : > { %s1122_s14 = smov %s945_s26  ;;  %s1123_s15 = smov %s863_s16 }
  0x64   : > { %s1124_s16 = smov %s1126_s20  ;;  %25 = sbr.rel (!%p23_p10) target bundleno = 10 (0xa), region = 107 }
  0x69   :  { %461 = vsyncpa [#allocation3], 1 }
  0x6a   :  { %463 = vsyncpa [#allocation3 + $0x1], 1 }
  0x6b   :  { %464 = vsyncpa [#allocation6], 1 }
  0x6c   :  { %466 = vsyncpa [#allocation6 + $0x1], 1 }
  0x6d   :  { %467 = vsyncpa [#allocation4], 1 }
  0x6e   :  { %469 = vsyncpa [#allocation4 + $0x1], 1 }
  0x6f   :  { %470 = vsyncpa [#allocation9], 1 }
  0x70   :  { %472 = vsyncpa [#allocation9 + $0x1], 1 }

</bundles_post_ra>
